<compile_context>
chip_gen: v7x
topology: tpu7x:2x2x1
jax: 0.10.0
libtpu: 0.0.40
codegen_flags: <defaults>
</compile_context>

<pallas_src>
import functools

import jax
import jax.numpy as jnp
from jax.experimental import pallas as pl
from jax.experimental.pallas import tpu as pltpu


def _round_up(a: int, m: int) -> int:
    return (a + m - 1) // m * m


def encoder_cnn_kernel(x_ref, wb_ref, w_ref, bgb_ref, o_ref,
                       shift_ref, sum_ref, ssq_ref,
                       *, batch, tb, channels, hw):
    """One batch tile of: global-avg-pool -> proj (stub) -> Linear -> BatchNorm1d.

    x_ref:     (tb, C*HW)      streamed image tile (native dtype, ragged last tile)
    wb_ref:    (C, F_pad)      backbone-stub projection (bf16, resident)
    w_ref:     (F_pad, E_pad)  linear weight stored transposed (bf16, resident)
    bgb_ref:   (8, E_pad)      row 0 = bias, row 1 = gamma, row 2 = beta (f32, resident)
    o_ref:     (B_out, E_pad)  resident output block; holds pre-BN activations until
                               the in-place normalize on the last grid step
    shift/sum/ssq_ref: (1, E_pad) BatchNorm batch-statistics scratch
    """
    i = pl.program_id(0)
    nb = pl.num_programs(0)

    # --- backbone stub: global average pool over HW (VPU/XLU, free while HBM-bound) ---
    x = x_ref[...]                                                       # (tb, C*HW)
    pooled = jnp.mean(x.reshape(tb, channels, hw).astype(jnp.float32), axis=-1)  # (tb, C) f32

    # --- channel projection (stub) + self.linear: bf16 MXU, f32 accumulation ---
    feat = jnp.dot(pooled.astype(jnp.bfloat16), wb_ref[...],
                   preferred_element_type=jnp.float32)                   # (tb, F_pad)
    lin = jnp.dot(feat.astype(jnp.bfloat16), w_ref[...],
                  preferred_element_type=jnp.float32)                    # (tb, E_pad)
    lin = lin + bgb_ref[0:1, :]

    # pre-BN activations go straight into the resident output block (no lin scratch)
    start = pl.multiple_of(i * tb, 8)
    o_ref[pl.ds(start, tb), :] = lin.astype(o_ref.dtype)

    # --- accumulate batch statistics; mask out-of-range rows of the ragged tile ---
    row = i * tb + jax.lax.broadcasted_iota(jnp.int32, (tb, 1), 0)
    valid = row < batch

    @pl.when(i == 0)
    def _():
        # per-feature shift (first tile's mean) stabilizes E[x^2] - E[x]^2
        n0 = min(batch, tb)                     # static Python int
        lin0 = jnp.where(valid, lin, 0.0)
        shift_ref[...] = jnp.sum(lin0, axis=0, keepdims=True) * (1.0 / n0)
        sum_ref[...] = jnp.zeros_like(sum_ref)
        ssq_ref[...] = jnp.zeros_like(ssq_ref)

    d = jnp.where(valid, lin - shift_ref[...], 0.0)
    sum_ref[...] += jnp.sum(d, axis=0, keepdims=True)
    ssq_ref[...] += jnp.sum(d * d, axis=0, keepdims=True)

    # --- finalize: BatchNorm1d (training-mode batch stats, biased var, eps=1e-5),
    #     normalizing the resident output block in place ---
    @pl.when(i == nb - 1)
    def _():
        inv_b = jnp.float32(1.0 / batch)
        mu_d = sum_ref[...] * inv_b
        mu = shift_ref[...] + mu_d
        var = jnp.maximum(ssq_ref[...] * inv_b - mu_d * mu_d, 0.0)
        inv_std = jax.lax.rsqrt(var + 1e-5)
        gamma = bgb_ref[1:2, :]
        beta = bgb_ref[2:3, :]
        # rows in [batch, B_out) hold garbage; the caller slices them off
        o_ref[...] = (gamma * (o_ref[...] - mu) * inv_std + beta).astype(o_ref.dtype)


def encoder_cnn_forward(images, wb, w, b, gamma, beta, *, block_b=None):
    """images: (B, C, H, W).  wb: (C, F) backbone-stub projection.  w: (F, E)
    linear weight stored transposed (linear.weight.T).  b/gamma/beta: (E,).
    Returns the (B, E) float32 training-mode forward output."""
    B, C, H, W = images.shape
    HW = H * W
    CHW = C * HW
    F = wb.shape[1]
    E = w.shape[1]
    F_pad = _round_up(F, 128)
    E_pad = _round_up(E, 128)
    x_itemsize = jnp.dtype(images.dtype).itemsize

    # --- generation-aware VMEM budget (v7x: 64 MiB/TC, v5e/v6e: 128 MiB) ---
    try:
        vmem_cap = int(pltpu.get_tpu_info().vmem_capacity_bytes)
    except Exception:
        vmem_cap = 64 * 1024 * 1024            # conservative (v7x per-TensorCore)

    resident_param_bytes = C * F_pad * 2 + F_pad * E_pad * 2 + 8 * E_pad * 4

    # --- batch tile: target the MXU M dim (<=256 rows), clamp to the VMEM budget ---
    if block_b is None:
        stream_budget = max(int(0.35 * vmem_cap) - 2 * resident_param_bytes, 1 << 20)
        tb = 256
        while tb > 8 and 2 * tb * CHW * x_itemsize > stream_budget:
            tb //= 2
    else:
        tb = block_b
    tb = max(8, min(_round_up(tb, 8), _round_up(B, 8)))

    nb = pl.cdiv(B, tb)
    B_out = nb * tb                            # only the (small) output is over-allocated

    # --- lane-dense 2-D view of the images; no wrapper-side pad/copy of the big tensor ---
    x2d = images.reshape(B, CHW)

    # --- parameters: bf16 for the MXU, zero-padded to lane-aligned widths ---
    wb_p = jnp.pad(wb, ((0, 0), (0, F_pad - F))).astype(jnp.bfloat16)          # (C, F_pad)
    w_p = jnp.pad(w, ((0, F_pad - F), (0, E_pad - E))).astype(jnp.bfloat16)    # (F_pad, E_pad)

    bgb = jnp.zeros((8, E_pad), jnp.float32)
    bgb = bgb.at[0, :E].set(b.astype(jnp.float32))
    bgb = bgb.at[1, :E].set(gamma.astype(jnp.float32))
    bgb = bgb.at[2, :E].set(beta.astype(jnp.float32))

    # --- explicit VMEM limit sized from the actual buffers ---
    need = (2 * tb * CHW * x_itemsize          # double-buffered x stream
            + 2 * resident_param_bytes         # resident weights (default 2 buffers)
            + 2 * B_out * E_pad * 4            # resident output block
            + 3 * E_pad * 4                    # BN statistics scratch
            + (4 << 20))                       # headroom
    vmem_limit = int(min(0.9 * vmem_cap, max(need, 32 << 20)))

    kernel = functools.partial(encoder_cnn_kernel, batch=B, tb=tb, channels=C, hw=HW)

    out_padded = pl.pallas_call(
        kernel,
        out_shape=jax.ShapeDtypeStruct((B_out, E_pad), jnp.float32),
        grid_spec=pltpu.PrefetchScalarGridSpec(
            num_scalar_prefetch=0,
            grid=(nb,),
            in_specs=[
                pl.BlockSpec((tb, CHW), lambda i: (i, 0)),        # streamed x tiles
                pl.BlockSpec((C, F_pad), lambda i: (0, 0)),       # resident weights
                pl.BlockSpec((F_pad, E_pad), lambda i: (0, 0)),
                pl.BlockSpec((8, E_pad), lambda i: (0, 0)),
            ],
            out_specs=pl.BlockSpec((B_out, E_pad), lambda i: (0, 0)),  # resident output
            scratch_shapes=[
                pltpu.VMEM((1, E_pad), jnp.float32),   # shift (first-tile mean)
                pltpu.VMEM((1, E_pad), jnp.float32),   # sum(lin - shift)
                pltpu.VMEM((1, E_pad), jnp.float32),   # sum((lin - shift)^2)
            ],
        ),
        compiler_params=pltpu.CompilerParams(
            # BN statistics / resident output carry across the batch grid axis.
            dimension_semantics=("arbitrary",),
            vmem_limit_bytes=vmem_limit,
        ),
    )(x2d, wb_p, w_p, bgb)

    return out_padded[:B, :E]


if __name__ == "__main__":
    # small shapes consistent with the module's forward (NCHW images)
    B, C, H, W = 10, 4, 16, 16
    F = 32                      # stand-in for resnet.fc.in_features (2048 in ResNet-152)
    E = 32                      # embed_size

    key = jax.random.PRNGKey(0)
    k_img, k_wb, k_w = jax.random.split(key, 3)

    images = jax.random.normal(k_img, (B, C, H, W), dtype=jnp.float32)

    # deterministic parameter init (mirrors EncoderCNN.init_weights)
    wb = jax.random.normal(k_wb, (C, F), dtype=jnp.float32) * 0.1     # backbone-stub proj
    w = jax.random.normal(k_w, (F, E), dtype=jnp.float32) * 0.02      # linear.weight ~ N(0, 0.02), stored (F, E)
    b = jnp.zeros((E,), dtype=jnp.float32)                            # linear.bias = 0
    gamma = jnp.ones((E,), dtype=jnp.float32)                         # bn.weight
    beta = jnp.zeros((E,), dtype=jnp.float32)                         # bn.bias

    # pure-JAX reference of the same computation; matmul inputs cast to bf16 to
    # mirror the kernel's bf16 MXU path (f32 accumulation in both)
    pooled = images.reshape(B, C, H * W).mean(axis=-1)
    feat_r = jnp.dot(pooled.astype(jnp.bfloat16), wb.astype(jnp.bfloat16),
                     preferred_element_type=jnp.float32)
    lin_r = jnp.dot(feat_r.astype(jnp.bfloat16), w.astype(jnp.bfloat16),
                    preferred_element_type=jnp.float32) + b
    mu = lin_r.mean(axis=0, keepdims=True)
    var = ((lin_r - mu) ** 2).mean(axis=0, keepdims=True)
    ref = gamma * (lin_r - mu) * jax.lax.rsqrt(var + 1e-5) + beta

    # 1) default tiling (single grid step)
    out = jax.block_until_ready(encoder_cnn_forward(images, wb, w, b, gamma, beta))
    assert out.shape == (B, E) and out.dtype == jnp.float32
    assert jnp.allclose(out, ref, atol=3e-2, rtol=3e-2)

    # 2) forced multi-tile grid: exercises ragged last tile, masked BN statistics
    #    and the cross-tile accumulate/finalize path
    out2 = jax.block_until_ready(
        encoder_cnn_forward(images, wb, w, b, gamma, beta, block_b=8))
    assert out2.shape == (B, E) and out2.dtype == jnp.float32
    assert jnp.allclose(out2, ref, atol=3e-2, rtol=3e-2)

    print("KERNEL_OK")
</pallas_src>

<mosaic_0001>
module attributes {stable_mosaic.version = 11 : i64} {
  func.func @encoder_cnn_kernel(%arg0: i32, %arg1: memref<16x1024xf32, #tpu.memory_space<vmem>>, %arg2: memref<4x128xbf16, #tpu.memory_space<vmem>>, %arg3: memref<128x128xbf16, #tpu.memory_space<vmem>>, %arg4: memref<8x128xf32, #tpu.memory_space<vmem>>, %arg5: memref<16x128xf32, #tpu.memory_space<vmem>>, %arg6: memref<1x128xf32, #tpu.memory_space<vmem>>, %arg7: memref<1x128xf32, #tpu.memory_space<vmem>>, %arg8: memref<1x128xf32, #tpu.memory_space<vmem>>) attributes {dimension_semantics = [#tpu.dimension_semantics<arbitrary>], iteration_bounds = array<i64: 1>, scalar_prefetch = 0 : i64, scratch_operands = 3 : i64, tpu.core_type = #tpu.core_type<tc>, window_params = [{transform_indices = @transform_0, window_bounds = array<i64: 16, 1024>}, {pipeline_mode = #tpu.pipeline_mode<synchronous>, transform_indices = @transform_1, window_bounds = array<i64: 4, 128>}, {pipeline_mode = #tpu.pipeline_mode<synchronous>, transform_indices = @transform_2, window_bounds = array<i64: 128, 128>}, {pipeline_mode = #tpu.pipeline_mode<synchronous>, transform_indices = @transform_3, window_bounds = array<i64: 8, 128>}, {pipeline_mode = #tpu.pipeline_mode<synchronous>, transform_indices = @transform_4, window_bounds = array<i64: 16, 128>}]} {
    %c0 = arith.constant 0 : index
    %c0_0 = arith.constant 0 : index
    %0 = vector.load %arg1[%c0, %c0_0] : memref<16x1024xf32, #tpu.memory_space<vmem>>, vector<16x1024xf32>
    %1 = vector.shape_cast %0 : vector<16x1024xf32> to vector<16x4x256xf32>
    %cst = arith.constant dense<0.000000e+00> : vector<16x4xf32>
    %2 = vector.multi_reduction <add>, %1, %cst [2] : vector<16x4x256xf32> to vector<16x4xf32>
    %cst_1 = arith.constant 2.560000e+02 : f32
    %3 = vector.broadcast %cst_1 : f32 to vector<16x4xf32>
    %4 = arith.divf %2, %3 : vector<16x4xf32>
    %5 = arith.truncf %4 : vector<16x4xf32> to vector<16x4xbf16>
    %c0_2 = arith.constant 0 : index
    %c0_3 = arith.constant 0 : index
    %6 = vector.load %arg2[%c0_2, %c0_3] : memref<4x128xbf16, #tpu.memory_space<vmem>>, vector<4x128xbf16>
    %cst_4 = arith.constant dense<0.000000e+00> : vector<16x128xf32>
    %7 = tpu.matmul %5, %6, %cst_4 {dimension_numbers = #tpu.dot_dimension_numbers<[1], [0], [0], [1], [0, 0, 1, 1], [], []>} : vector<16x4xbf16>, vector<4x128xbf16>, vector<16x128xf32> -> vector<16x128xf32>
    %8 = arith.truncf %7 : vector<16x128xf32> to vector<16x128xbf16>
    %c0_5 = arith.constant 0 : index
    %c0_6 = arith.constant 0 : index
    %9 = vector.load %arg3[%c0_5, %c0_6] : memref<128x128xbf16, #tpu.memory_space<vmem>>, vector<128x128xbf16>
    %cst_7 = arith.constant dense<0.000000e+00> : vector<16x128xf32>
    %10 = tpu.matmul %8, %9, %cst_7 {dimension_numbers = #tpu.dot_dimension_numbers<[1], [0], [0], [1], [0, 0, 1, 1], [], []>} : vector<16x128xbf16>, vector<128x128xbf16>, vector<16x128xf32> -> vector<16x128xf32>
    %c0_8 = arith.constant 0 : index
    %c0_9 = arith.constant 0 : index
    %11 = vector.load %arg4[%c0_8, %c0_9] : memref<8x128xf32, #tpu.memory_space<vmem>>, vector<1x128xf32>
    %12 = vector.broadcast %11 : vector<1x128xf32> to vector<16x128xf32>
    %13 = arith.addf %10, %12 : vector<16x128xf32>
    %c16_i32 = arith.constant 16 : i32
    %14 = arith.muli %arg0, %c16_i32 : i32
    %15 = tpu.assume_multiple %14, 8 : i32
    %16 = arith.index_cast %15 : i32 to index
    %c0_10 = arith.constant 0 : index
    %17 = vector.load %arg5[%16, %c0_10] : memref<16x128xf32, #tpu.memory_space<vmem>>, vector<16x128xf32>
    tpu.vector_store %arg5[%16, %c0_10], %13 {strides = array<i32>} : memref<16x128xf32, #tpu.memory_space<vmem>>, vector<16x128xf32>,
    %c16_i32_11 = arith.constant 16 : i32
    %18 = arith.muli %arg0, %c16_i32_11 : i32
    %19 = tpu.iota {dimensions = array<i32: 0>} : vector<16x1xi32>
    %20 = vector.broadcast %18 : i32 to vector<16x1xi32>
    %21 = arith.addi %20, %19 : vector<16x1xi32>
    %c10_i32 = arith.constant 10 : i32
    %22 = vector.broadcast %c10_i32 : i32 to vector<16x1xi32>
    %23 = arith.cmpi slt, %21, %22 : vector<16x1xi32>
    %c0_i32 = arith.constant 0 : i32
    %24 = arith.cmpi eq, %arg0, %c0_i32 : i32
    %25 = arith.extui %24 : i1 to i32
    %c0_i32_12 = arith.constant 0 : i32
    %26 = arith.cmpi ne, %25, %c0_i32_12 : i32
    scf.if %26 {
      %cst_28 = arith.constant 0.000000e+00 : f32
      %48 = vector.shape_cast %23 : vector<16x1xi1> to vector<16x1xi1>
      %49 = vector.broadcast %48 : vector<16x1xi1> to vector<16x128xi1>
      %50 = vector.broadcast %cst_28 : f32 to vector<16x128xf32>
      %51 = arith.select %49, %13, %50 : vector<16x128xi1>, vector<16x128xf32>
      %cst_29 = arith.constant dense<0.000000e+00> : vector<128xf32>
      %52 = vector.multi_reduction <add>, %51, %cst_29 [0] : vector<16x128xf32> to vector<128xf32>
      %53 = vector.shape_cast %52 : vector<128xf32> to vector<1x128xf32>
      %cst_30 = arith.constant 1.000000e-01 : f32
      %54 = vector.broadcast %cst_30 : f32 to vector<1x128xf32>
      %55 = arith.mulf %53, %54 : vector<1x128xf32>
      %c0_31 = arith.constant 0 : index
      %c0_32 = arith.constant 0 : index
      %56 = vector.load %arg6[%c0_31, %c0_32] : memref<1x128xf32, #tpu.memory_space<vmem>>, vector<1x128xf32>
      tpu.vector_store %arg6[%c0_31, %c0_32], %55 {strides = array<i32>} : memref<1x128xf32, #tpu.memory_space<vmem>>, vector<1x128xf32>,
      %cst_33 = arith.constant 0.000000e+00 : f32
      %57 = vector.broadcast %cst_33 : f32 to vector<1x128xf32>
      %c0_34 = arith.constant 0 : index
      %c0_35 = arith.constant 0 : index
      %58 = vector.load %arg7[%c0_34, %c0_35] : memref<1x128xf32, #tpu.memory_space<vmem>>, vector<1x128xf32>
      tpu.vector_store %arg7[%c0_34, %c0_35], %57 {strides = array<i32>} : memref<1x128xf32, #tpu.memory_space<vmem>>, vector<1x128xf32>,
      %cst_36 = arith.constant 0.000000e+00 : f32
      %59 = vector.broadcast %cst_36 : f32 to vector<1x128xf32>
      %c0_37 = arith.constant 0 : index
      %c0_38 = arith.constant 0 : index
      %60 = vector.load %arg8[%c0_37, %c0_38] : memref<1x128xf32, #tpu.memory_space<vmem>>, vector<1x128xf32>
      tpu.vector_store %arg8[%c0_37, %c0_38], %59 {strides = array<i32>} : memref<1x128xf32, #tpu.memory_space<vmem>>, vector<1x128xf32>,
    } else {
    }
    %c0_13 = arith.constant 0 : index
    %c0_14 = arith.constant 0 : index
    %27 = vector.load %arg6[%c0_13, %c0_14] : memref<1x128xf32, #tpu.memory_space<vmem>>, vector<1x128xf32>
    %28 = vector.broadcast %27 : vector<1x128xf32> to vector<16x128xf32>
    %29 = arith.subf %13, %28 : vector<16x128xf32>
    %cst_15 = arith.constant 0.000000e+00 : f32
    %30 = vector.shape_cast %23 : vector<16x1xi1> to vector<16x1xi1>
    %31 = vector.broadcast %30 : vector<16x1xi1> to vector<16x128xi1>
    %32 = vector.broadcast %cst_15 : f32 to vector<16x128xf32>
    %33 = arith.select %31, %29, %32 : vector<16x128xi1>, vector<16x128xf32>
    %c0_16 = arith.constant 0 : index
    %c0_17 = arith.constant 0 : index
    %34 = vector.load %arg7[%c0_16, %c0_17] : memref<1x128xf32, #tpu.memory_space<vmem>>, vector<1x128xf32>
    %cst_18 = arith.constant dense<0.000000e+00> : vector<128xf32>
    %35 = vector.multi_reduction <add>, %33, %cst_18 [0] : vector<16x128xf32> to vector<128xf32>
    %36 = vector.shape_cast %35 : vector<128xf32> to vector<1x128xf32>
    %37 = arith.addf %34, %36 : vector<1x128xf32>
    %c0_19 = arith.constant 0 : index
    %c0_20 = arith.constant 0 : index
    %38 = vector.load %arg7[%c0_19, %c0_20] : memref<1x128xf32, #tpu.memory_space<vmem>>, vector<1x128xf32>
    tpu.vector_store %arg7[%c0_19, %c0_20], %37 {strides = array<i32>} : memref<1x128xf32, #tpu.memory_space<vmem>>, vector<1x128xf32>,
    %c0_21 = arith.constant 0 : index
    %c0_22 = arith.constant 0 : index
    %39 = vector.load %arg8[%c0_21, %c0_22] : memref<1x128xf32, #tpu.memory_space<vmem>>, vector<1x128xf32>
    %40 = arith.mulf %33, %33 : vector<16x128xf32>
    %cst_23 = arith.constant dense<0.000000e+00> : vector<128xf32>
    %41 = vector.multi_reduction <add>, %40, %cst_23 [0] : vector<16x128xf32> to vector<128xf32>
    %42 = vector.shape_cast %41 : vector<128xf32> to vector<1x128xf32>
    %43 = arith.addf %39, %42 : vector<1x128xf32>
    %c0_24 = arith.constant 0 : index
    %c0_25 = arith.constant 0 : index
    %44 = vector.load %arg8[%c0_24, %c0_25] : memref<1x128xf32, #tpu.memory_space<vmem>>, vector<1x128xf32>
    tpu.vector_store %arg8[%c0_24, %c0_25], %43 {strides = array<i32>} : memref<1x128xf32, #tpu.memory_space<vmem>>, vector<1x128xf32>,
    %c0_i32_26 = arith.constant 0 : i32
    %45 = arith.cmpi eq, %arg0, %c0_i32_26 : i32
    %46 = arith.extui %45 : i1 to i32
    %c0_i32_27 = arith.constant 0 : i32
    %47 = arith.cmpi ne, %46, %c0_i32_27 : i32
    scf.if %47 {
      %c0_28 = arith.constant 0 : index
      %c0_29 = arith.constant 0 : index
      %48 = vector.load %arg7[%c0_28, %c0_29] : memref<1x128xf32, #tpu.memory_space<vmem>>, vector<1x128xf32>
      %cst_30 = arith.constant 1.000000e-01 : f32
      %49 = vector.broadcast %cst_30 : f32 to vector<1x128xf32>
      %50 = arith.mulf %48, %49 : vector<1x128xf32>
      %c0_31 = arith.constant 0 : index
      %c0_32 = arith.constant 0 : index
      %51 = vector.load %arg6[%c0_31, %c0_32] : memref<1x128xf32, #tpu.memory_space<vmem>>, vector<1x128xf32>
      %52 = arith.addf %51, %50 : vector<1x128xf32>
      %c0_33 = arith.constant 0 : index
      %c0_34 = arith.constant 0 : index
      %53 = vector.load %arg8[%c0_33, %c0_34] : memref<1x128xf32, #tpu.memory_space<vmem>>, vector<1x128xf32>
      %cst_35 = arith.constant 1.000000e-01 : f32
      %54 = vector.broadcast %cst_35 : f32 to vector<1x128xf32>
      %55 = arith.mulf %53, %54 : vector<1x128xf32>
      %56 = arith.mulf %50, %50 : vector<1x128xf32>
      %57 = arith.subf %55, %56 : vector<1x128xf32>
      %cst_36 = arith.constant 0.000000e+00 : f32
      %58 = vector.broadcast %cst_36 : f32 to vector<1x128xf32>
      %59 = arith.maximumf %57, %58 : vector<1x128xf32>
      %cst_37 = arith.constant 9.99999974E-6 : f32
      %60 = vector.broadcast %cst_37 : f32 to vector<1x128xf32>
      %61 = arith.addf %59, %60 : vector<1x128xf32>
      %62 = math.rsqrt %61 : vector<1x128xf32>
      %c1 = arith.constant 1 : index
      %c0_38 = arith.constant 0 : index
      %63 = vector.load %arg4[%c1, %c0_38] : memref<8x128xf32, #tpu.memory_space<vmem>>, vector<1x128xf32>
      %c2 = arith.constant 2 : index
      %c0_39 = arith.constant 0 : index
      %64 = vector.load %arg4[%c2, %c0_39] : memref<8x128xf32, #tpu.memory_space<vmem>>, vector<1x128xf32>
      %c0_40 = arith.constant 0 : index
      %c0_41 = arith.constant 0 : index
      %65 = vector.load %arg5[%c0_40, %c0_41] : memref<16x128xf32, #tpu.memory_space<vmem>>, vector<16x128xf32>
      %66 = vector.broadcast %52 : vector<1x128xf32> to vector<16x128xf32>
      %67 = arith.subf %65, %66 : vector<16x128xf32>
      %68 = vector.broadcast %63 : vector<1x128xf32> to vector<16x128xf32>
      %69 = arith.mulf %68, %67 : vector<16x128xf32>
      %70 = vector.broadcast %62 : vector<1x128xf32> to vector<16x128xf32>
      %71 = arith.mulf %69, %70 : vector<16x128xf32>
      %72 = vector.broadcast %64 : vector<1x128xf32> to vector<16x128xf32>
      %73 = arith.addf %71, %72 : vector<16x128xf32>
      %c0_42 = arith.constant 0 : index
      %c0_43 = arith.constant 0 : index
      %74 = vector.load %arg5[%c0_42, %c0_43] : memref<16x128xf32, #tpu.memory_space<vmem>>, vector<16x128xf32>
      tpu.vector_store %arg5[%c0_42, %c0_43], %73 {strides = array<i32>} : memref<16x128xf32, #tpu.memory_space<vmem>>, vector<16x128xf32>,
    } else {
    }
    return
  }
  func.func @transform_0(%arg0: i32) -> (i32, i32) {
    %c0_i32 = arith.constant 0 : i32
    %c0_i32_0 = arith.constant 0 : i32
    return %arg0, %c0_i32 : i32, i32
  }
  func.func @transform_1(%arg0: i32) -> (i32, i32) {
    %c0_i32 = arith.constant 0 : i32
    %c0_i32_0 = arith.constant 0 : i32
    %c0_i32_1 = arith.constant 0 : i32
    return %c0_i32, %c0_i32_0 : i32, i32
  }
  func.func @transform_2(%arg0: i32) -> (i32, i32) {
    %c0_i32 = arith.constant 0 : i32
    %c0_i32_0 = arith.constant 0 : i32
    %c0_i32_1 = arith.constant 0 : i32
    return %c0_i32, %c0_i32_0 : i32, i32
  }
  func.func @transform_3(%arg0: i32) -> (i32, i32) {
    %c0_i32 = arith.constant 0 : i32
    %c0_i32_0 = arith.constant 0 : i32
    %c0_i32_1 = arith.constant 0 : i32
    return %c0_i32, %c0_i32_0 : i32, i32
  }
  func.func @transform_4(%arg0: i32) -> (i32, i32) {
    %c0_i32 = arith.constant 0 : i32
    %c0_i32_0 = arith.constant 0 : i32
    %c0_i32_1 = arith.constant 0 : i32
    return %c0_i32, %c0_i32_0 : i32, i32
  }
}

</mosaic_0001>

<bundles_post_ra>
// kernel: tpu_custom_call.1
= control target key start
LH: loop header
LB: loop body
LE: loop exit
PB: predicated region body
PF: predicated region fallthrough
CT: control target
= control target key end

     0   :  { %9 = vsyncpa [#allocation6], 0  ;;  %s1380_s0 = inlined_call_operand.hbm [shape: f32[10,1024], index: 0, kind: input, shape index: {}]   ;;  %s1381_s1 = inlined_call_operand.vmem [shape: bf16[4,128], index: 1, kind: input, shape index: {}]   ;;  %s1382_s2 = inlined_call_operand.hbm [shape: bf16[128,128], index: 2, kind: input, shape index: {}]   ;;  %s1383_s3 = inlined_call_operand.vmem [shape: f32[8,128], index: 3, kind: input, shape index: {}]   ;;  %s1384_s4 = inlined_call_operand.hbm [shape: f32[16,128], index: 4, kind: output, shape index: {}]  }
   0x1   :  { %10 = vsyncpa [#allocation9], 0 }
   0x2   :  { %11 = vsyncpa [#allocation7], 0  ;;  %s1138_s15 = smov [#allocation5]   ;;  %s1066_s19 = scalar_lea.hbm %s1380_s0, 2048 }
   0x3   :  { %s17_s16 = sshll.u32 %s1138_s15, 4  ;;  %p1067_p0 = scmp.ne.s32.totalorder %s1380_s0, %s1066_s19  ;;  %s18_s16 = int_to_ptr.vmem [resolvable:$true] %s17_s16 }
   0x4   :  { %p1070_p1 = scmp.lt.u32.totalorder %s1066_s19, %s1380_s0 }
   0x6   :  { %p1072_p2 = pnand %p1070_p1, %p1067_p0 }
   0x8   :  { %1075 = shalt.err (!%p1072_p2)
}
   0x9   :  { %s1076_s24 = scalar_lea.vmem %s18_s16, 2048  ;;  %p1081_p4 = scmp.lt.s32.totalorder %s18_s16, %s18_s16 }
   0xa   :  { %p1077_p3 = scmp.ne.s32.totalorder %s18_s16, %s1076_s24  ;;  %p1082_p5 = scmp.lt.s32.totalorder %s1076_s24, %s1076_s24 }
   0xc   :  { %p1083_p6 = por %p1082_p5, %p1081_p4 }
   0xe   :  { %p1084_p7 = pnand %p1083_p6, %p1077_p3 }
  0x10   :  { %1087 = shalt.err (!%p1084_p7)
}
  0x11   :  { %s1139_s25 = smov 1024   ;;  %s1140_s26 = smov 64  }
  0x12   :  { %23 = dma.hbm_to_vmem [thread:$0]  %s1380_s0, 2048, %s18_s16, [#allocation6], %s1139_s25, %s1139_s25, %s1140_s26  }
  0x13   :  { %s1141_s29 = smov [#allocation8]   ;;  %s1088_s7 = scalar_lea.hbm %s1382_s2, 1024 }
  0x14   :  { %s31_s30 = sshll.u32 %s1141_s29, 4  ;;  %p1089_p8 = scmp.ne.s32.totalorder %s1382_s2, %s1088_s7  ;;  %s32_s30 = int_to_ptr.vmem [resolvable:$true] %s31_s30 }
  0x15   :  { %p1092_p9 = scmp.lt.u32.totalorder %s1088_s7, %s1382_s2 }
  0x17   :  { %p1094_p10 = pnand %p1092_p9, %p1089_p8 }
  0x19   :  { %1097 = shalt.err (!%p1094_p10)
}
  0x1a   :  { %s1098_s12 = scalar_lea.vmem %s32_s30, 1024  ;;  %p1103_p12 = scmp.lt.s32.totalorder %s32_s30, %s32_s30 }
  0x1b   :  { %p1099_p11 = scmp.ne.s32.totalorder %s32_s30, %s1098_s12  ;;  %p1104_p13 = scmp.lt.s32.totalorder %s1098_s12, %s1098_s12 }
  0x1d   :  { %p1105_p0 = por %p1104_p13, %p1103_p12 }
  0x1f   :  { %p1106_p1 = pnand %p1105_p0, %p1099_p11 }
  0x21   :  { %1109 = shalt.err (!%p1106_p1)
}
  0x22   :  { %s1142_s0 = smov 4  }
  0x23   :  { %37 = dma.hbm_to_vmem [thread:$0]  %s1382_s2, 1024, %s32_s30, [#allocation9], %s1140_s26, %s1140_s26, %s1142_s0  }
  0x24   :  { %1132 = dma.done.wait [#allocation6], 2048  }
  0x25   :  { %1133 = vsyncadd [#allocation6], 4294965248 }
  0x26   :  { %1134 = dma.done.wait [#allocation9], 1024  }
  0x27   :  { %1135 = vsyncadd [#allocation9], 4294966272  ;;  %v116_v0 = vlaneseq  ;;  %v1143_v1 = vmov 1983009808   ;;  %v1144_v3 = vmov 1934713408  }
  0x28   :  { %v114_v2 = vunpack.c.l.s4 %v1143_v1  ;;  %v146_v4 = vunpack.c.l.s4 %v1144_v3  ;;  %v55_v8 = vld [vmem:[#allocation5 + $0x40] sm:$0xff]  ;;  %v56_v9 = vld [vmem:[#allocation5 + $0x48] sm:$0xff]  ;;  %v57_v10 = vld [vmem:[#allocation5 + $0x50] sm:$0xff]  ;;  %vm431_vm0 = vcmask 1043456   ;;  %vm670_vm1 = vcmask 1041408   ;;  %s1147_s19 = smov [#allocation10]  }
  0x29   :  { %v1200_v6 = vshrl.u32 %v116_v0, 7  ;;  %v58_v12 = vld [vmem:[#allocation5 + $0x58] sm:$0xff]  ;;  %v59_v13 = vld [vmem:[#allocation5 + $0x60] sm:$0xff]  ;;  %v60_v14 = vld [vmem:[#allocation5 + $0x68] sm:$0xff]  ;;  %vm1146_vm2 = vmmov 0   ;;  %vm644_vm3 = vcmask 1041409  }
  0x2a   :  { %v115_v5 = vunpack.c.0.s8 %v114_v2  ;;  %v147_v7 = vunpack.c.0.s8 %v146_v4  ;;  %v61_v15 = vld [vmem:[#allocation5 + $0x70] sm:$0xff]  ;;  %v62_v16 = vld [vmem:[#allocation5 + $0x78] sm:$0xff]  ;;  %v970_v17 = vcombine.low %v55_v8, %v59_v13  ;;  %v971_v18 = vcombine.low %v56_v9, %v60_v14  ;;  %v1205_v19 = vld [vmem:[#allocation5] sm:$0xff]  ;;  %s949_s20 = sshll.u32 %s1147_s19, 4  ;;  %s950_s20 = int_to_ptr.vmem [resolvable:$true] %s949_s20 }
  0x2b   :  { %v974_v20 = vcombine.high %v55_v8, %v59_v13  ;;  %v975_v21 = vcombine.high %v56_v9, %v60_v14  ;;  %v972_v23 = vcombine.low %v57_v10, %v61_v15  ;;  %v973_v24 = vcombine.low %v58_v12, %v62_v16  ;;  %v1210_v25 = vld [vmem:[#allocation5 + $0x8] sm:$0xff]  ;;  %v1212_v26 = vld [vmem:[#allocation5 + $0x10] sm:$0xff]  ;;  %v1214_v27 = vld [vmem:[#allocation5 + $0x18] sm:$0xff]  ;;  %s1110_s23 = scalar_lea.vmem %s950_s20, 256  ;;  %p1115_p3 = scmp.lt.s32.totalorder %s950_s20, %s950_s20 }
  0x2c   :  { %v1203_v11 = vsub.s32 %v115_v5, %v1200_v6  ;;  %v1208_v22 = vsub.s32 %v147_v7, %v1200_v6  ;;  %v976_v28 = vcombine.high %v57_v10, %v61_v15  ;;  %v1218_v31 = vld [vmem:[#allocation5 + $0x20] sm:$0xff]  ;;  %v1220_v32 = vld [vmem:[#allocation5 + $0x28] sm:$0xff]  ;;  %v1222_v33 = vld [vmem:[#allocation5 + $0x30] sm:$0xff]  ;;  %v977_v35 = vcombine.high %v58_v12, %v62_v16  ;;  %p1111_p2 = scmp.ne.s32.totalorder %s950_s20, %s1110_s23  ;;  %p1116_p4 = scmp.lt.s32.totalorder %s1110_s23, %s1110_s23 }
  0x2d   :  { %v1229_v38 = vld [vmem:[#allocation5 + $0x38] sm:$0xff]  ;;  %v962_v39 = vcombine.low %v1205_v19, %v1218_v31  ;;  %v963_v40 = vcombine.low %v1210_v25, %v1220_v32  ;;  %v964_v41 = vcombine.low %v1212_v26, %v1222_v33  ;;  %vm646_vm4 = vcmask 1042434  }
  0x2e   :  { %v255_v29 = vrot.slane %v970_v17, %v1203_v11  ;;  %v262_v30 = vrot.slane %v971_v18, %v1203_v11  ;;  %v1225_v34 = vrot.slane %v974_v20, %v1203_v11  ;;  %v271_v36 = vrot.slane %v972_v23, %v1203_v11  ;;  %p1117_p5 = por %p1116_p4, %p1115_p3 }
  0x2f   :  { %v278_v37 = vrot.slane %v973_v24, %v1203_v11  ;;  %v965_v42 = vcombine.low %v1214_v27, %v1229_v38  ;;  %v1240_v43 = vrot.slane %v975_v21, %v1203_v11  ;;  %v1243_v44 = vrot.slane %v976_v28, %v1203_v11 }
  0x30   :  { %v279_v45 = vcombine.low %v255_v29, %v271_v36  ;;  %v119_v47 = vrot.slane %v962_v39, %v1203_v11  ;;  %v126_v48 = vrot.slane %v963_v40, %v1203_v11  ;;  %v135_v49 = vrot.slane %v964_v41, %v1203_v11  ;;  %p1118_p6 = pnand %p1117_p5, %p1111_p2 }
  0x31   :  { %v295_v46 = vcombine.low %v262_v30, %v278_v37  ;;  %v142_v50 = vrot.slane %v965_v42, %v1203_v11  ;;  %v280_v51 = vcombine.high %v255_v29, %v271_v36  ;;  %v296_v52 = vcombine.high %v262_v30, %v278_v37 }
  0x32   :  { %v287_v53 = vrot.slane %v279_v45, %v1208_v22  ;;  %v1252_v55 = vrot.slane %v977_v35, %v1203_v11  ;;  %v347_v56 = vcombine.low %v1225_v34, %v1243_v44  ;;  %v143_v57 = vcombine.low %v119_v47, %v135_v49 }
  0x33   :  { %v303_v54 = vrot.slane %v295_v46, %v1208_v22  ;;  %v159_v58 = vcombine.low %v126_v48, %v142_v50  ;;  %v294_v59 = vrot.slane %v280_v51, %v1208_v22  ;;  %v310_v60 = vrot.slane %v296_v52, %v1208_v22 }
  0x34   :  { %v151_v2 = vrot.slane %v143_v57, %v1208_v22  ;;  %v363_v15 = vcombine.low %v1240_v43, %v1252_v55  ;;  %v144_v28 = vcombine.high %v119_v47, %v135_v49  ;;  %v160_v36 = vcombine.high %v126_v48, %v142_v50 }
  0x35   :  { %v311_v61 = vcombine.low %v287_v53, %v303_v54  ;;  %v986_v62 = vcombine.low %v303_v54, %v303_v54  ;;  %v312_v63 = vcombine.high %v287_v53, %v303_v54  ;;  %v987_v1 = vcombine.high %v303_v54, %v303_v54 }
  0x36   :  { %v167_v3 = vrot.slane %v159_v58, %v1208_v22  ;;  %v313_v4 = vcombine.low %v294_v59, %v310_v60  ;;  %v988_v5 = vcombine.low %v310_v60, %v310_v60  ;;  %v158_v39 = vrot.slane %v144_v28, %v1208_v22 }
  0x37   :  { %v472_v7 = vsel %vm431_vm0, %v311_v61, 0.0  ;;  %v473_v8 = vsel %vm431_vm0, %v986_v62, 0.0  ;;  %v477_v9 = vsel %vm431_vm0, %v312_v63, 0.0  ;;  %v478_v10 = vsel %vm431_vm0, %v987_v1, 0.0 }
  0x38   :  { %v474_v12 = vadd.f32 %v473_v8, %v472_v7  ;;  %v175_v13 = vcombine.low %v151_v2, %v167_v3  ;;  %v978_v14 = vcombine.low %v167_v3, %v167_v3  ;;  %v479_v16 = vadd.f32 %v478_v10, %v477_v9 }
  0x39   :  { %v176_v17 = vcombine.high %v151_v2, %v167_v3  ;;  %v979_v18 = vcombine.high %v167_v3, %v167_v3  ;;  %v482_v20 = vsel %vm431_vm0, %v313_v4, 0.0  ;;  %v483_v24 = vsel %vm431_vm0, %v988_v5, 0.0 }
  0x3a   :  { %475 = vadd.xlane.f32.xlu1 %v474_v12  ;;  %v432_v21 = vsel %vm431_vm0, %v175_v13, 0.0  ;;  %v433_v23 = vsel %vm431_vm0, %v978_v14, 0.0  ;;  %v314_v40 = vcombine.high %v294_v59, %v310_v60  ;;  %v989_v41 = vcombine.high %v310_v60, %v310_v60 }
  0x3b   :  { %v434_v29 = vadd.f32 %v433_v23, %v432_v21  ;;  %v437_v30 = vsel %vm431_vm0, %v176_v17, 0.0  ;;  %v438_v35 = vsel %vm431_vm0, %v979_v18, 0.0  ;;  %v174_v42 = vrot.slane %v160_v36, %v1208_v22 }
  0x3c   :  { %v439_v37 = vadd.f32 %v438_v35, %v437_v30  ;;  %v355_v45 = vrot.slane %v347_v56, %v1208_v22  ;;  %v371_v46 = vrot.slane %v363_v15, %v1208_v22  ;;  %v966_v47 = vcombine.high %v1205_v19, %v1218_v31 }
  0x3d   :  { %435 = vadd.xlane.f32.xlu0 %v434_v29  ;;  %v484_v49 = vadd.f32 %v483_v24, %v482_v20  ;;  %v487_v51 = vsel %vm431_vm0, %v314_v40, 0.0  ;;  %v488_v48 = vsel %vm431_vm0, %v989_v41, 0.0  ;;  %v967_v50 = vcombine.high %v1210_v25, %v1220_v32 }
  0x3e   :  { %480 = vadd.xlane.f32.xlu1 %v479_v16  ;;  %v177_v52 = vcombine.low %v158_v39, %v174_v42  ;;  %v980_v53 = vcombine.low %v174_v42, %v174_v42  ;;  %v178_v54 = vcombine.high %v158_v39, %v174_v42  ;;  %v968_v56 = vcombine.high %v1212_v26, %v1222_v33 }
  0x3f   :  { %v489_v57 = vadd.f32 %v488_v48, %v487_v51  ;;  %v981_v58 = vcombine.high %v174_v42, %v174_v42  ;;  %v379_v59 = vcombine.low %v355_v45, %v371_v46  ;;  %v990_v60 = vcombine.low %v371_v46, %v371_v46 }
  0x40   :  { %v442_v19 = vsel %vm431_vm0, %v177_v52, 0.0  ;;  %v443_v31 = vsel %vm431_vm0, %v980_v53, 0.0  ;;  %v447_v61 = vsel %vm431_vm0, %v178_v54, 0.0  ;;  %v187_v62 = vrot.slane %v966_v47, %v1203_v11 }
  0x41   :  { %440 = vadd.xlane.f32.xlu0 %v439_v37  ;;  %v444_v25 = vadd.f32 %v443_v31, %v442_v19  ;;  %v448_v32 = vsel %vm431_vm0, %v981_v58, 0.0  ;;  %v492_v63 = vsel %vm431_vm0, %v379_v59, 0.0  ;;  %v493_v26 = vsel %vm431_vm0, %v990_v60, 0.0  ;;  %v545_v60 = vld [vmem:[%s1381_s1] sm:$0x3] }
  0x42   :  { %485 = vadd.xlane.f32.xlu1 %v484_v49  ;;  %v449_v33 = vadd.f32 %v448_v32, %v447_v61  ;;  %v194_v1 = vrot.slane %v967_v50, %v1203_v11  ;;  %v969_v2 = vcombine.high %v1214_v27, %v1229_v38  ;;  %v203_v3 = vrot.slane %v968_v56, %v1203_v11  ;;  %v1056_v61 = vld [vmem:[#allocation8] sm:$0xff]   ;;  %v1059_v32 = vld [vmem:[#allocation8 + $0x18] sm:$0xff]  }
  0x43   :  { %v380_v4 = vcombine.high %v355_v45, %v371_v46  ;;  %v991_v5 = vcombine.high %v371_v46, %v371_v46  ;;  %v348_v7 = vcombine.high %v1225_v34, %v1243_v44  ;;  %v364_v8 = vcombine.high %v1240_v43, %v1252_v55 }
  0x44   :  { %v494_v9 = vadd.f32 %v493_v26, %v492_v63  ;;  %v210_v10 = vrot.slane %v969_v2, %v1203_v11  ;;  %v211_v12 = vcombine.low %v187_v62, %v203_v3  ;;  %v212_v13 = vcombine.high %v187_v62, %v203_v3  ;;  %v1057_v62 = vld [vmem:[#allocation8 + $0x8] sm:$0xff]   ;;  %v1060_v63 = vld [vmem:[#allocation8 + $0x20] sm:$0xff]  }
  0x45   :  { %445 = vadd.xlane.f32.xlu0 %v444_v25  ;;  %v497_v14 = vsel %vm431_vm0, %v380_v4, 0.0  ;;  %v498_v27 = vsel %vm431_vm0, %v991_v5, 0.0  ;;  %v362_v38 = vrot.slane %v348_v7, %v1208_v22  ;;  %v378_v15 = vrot.slane %v364_v8, %v1208_v22  ;;  %v1058_v25 = vld [vmem:[#allocation8 + $0x10] sm:$0xff]   ;;  %v1061_v26 = vld [vmem:[#allocation8 + $0x28] sm:$0xff]  }
  0x46   :  { %490 = vadd.xlane.f32.xlu1 %v489_v57  ;;  %v219_v34 = vrot.slane %v211_v12, %v1208_v22  ;;  %v227_v44 = vcombine.low %v194_v1, %v210_v10  ;;  %v226_v55 = vrot.slane %v212_v13, %v1208_v22  ;;  %v228_v17 = vcombine.high %v194_v1, %v210_v10 }
  0x47   :  { %v381_v16 = vcombine.low %v362_v38, %v378_v15  ;;  %v992_v43 = vcombine.low %v378_v15, %v378_v15  ;;  %v499_v18 = vadd.f32 %v498_v27, %v497_v14  ;;  %v382_v20 = vcombine.high %v362_v38, %v378_v15 }
  0x48   :  { %v235_v11 = vrot.slane %v227_v44, %v1208_v22  ;;  %v242_v24 = vrot.slane %v228_v17, %v1208_v22  ;;  %v993_v28 = vcombine.high %v378_v15, %v378_v15  ;;  %v1145_v19 = vmov 0.0  }
  0x49   :  { %450 = vadd.xlane.f32.xlu0 %v449_v33  ;;  %v502_v21 = vsel %vm431_vm0, %v381_v16, 0.0  ;;  %v503_v23 = vsel %vm431_vm0, %v992_v43, 0.0  ;;  %v507_v22 = vsel %vm431_vm0, %v382_v20, 0.0  ;;  %1018 = vmatprep.subr.bf16.mxu0 %v1145_v19  ;;  %857 = vst [vmem:[#allocation3] sm:$0x1] %v1145_v19  ;;  %v672_v31 = vsel %vm670_vm1, %v545_v60, 0 }
  0x4a   :  { %495 = vadd.xlane.f32.xlu1 %v494_v9  ;;  %v243_v29 = vcombine.low %v219_v34, %v235_v11  ;;  %v982_v30 = vcombine.low %v235_v11, %v235_v11  ;;  %v244_v35 = vcombine.high %v219_v34, %v235_v11  ;;  %v983_v36 = vcombine.high %v235_v11, %v235_v11  ;;  %v1062_v33 = vld [vmem:[#allocation8 + $0x30] sm:$0xff]  }
  0x4b   :  { %v245_v37 = vcombine.low %v226_v55, %v242_v24  ;;  %v984_v39 = vcombine.low %v242_v24, %v242_v24  ;;  %v504_v47 = vadd.f32 %v503_v23, %v502_v21  ;;  %v508_v49 = vsel %vm431_vm0, %v993_v28, 0.0  ;;  %858 = vst [vmem:[#allocation4] sm:$0x1] %v1145_v19  ;;  %1024 = vmatprep.subr.bf16.mxu1 %v1145_v19 }
  0x4c   :  { %v452_v40 = vsel %vm431_vm0, %v243_v29, 0.0  ;;  %v453_v41 = vsel %vm431_vm0, %v982_v30, 0.0  ;;  %v457_v42 = vsel %vm431_vm0, %v244_v35, 0.0  ;;  %v458_v45 = vsel %vm431_vm0, %v983_v36, 0.0  ;;  %1019 = vmatpush3.bf16.msra.mxu0 %v672_v31  ;;  %1020 = vmatprep.mubr.msk.bf16.mxu0 %vm1146_vm2, %v1145_v19 }
  0x4d   :  { %v454_v46 = vadd.f32 %v453_v41, %v452_v40  ;;  %v459_v51 = vadd.f32 %v458_v45, %v457_v42  ;;  %v462_v48 = vsel %vm431_vm0, %v245_v37, 0.0  ;;  %v463_v50 = vsel %vm431_vm0, %v984_v39, 0.0  ;;  %1040 = vmatprep.mubr.msk.bf16.mxu1 %vm1146_vm2, %v1145_v19  ;;  %1025 = vmatpush3.bf16.msra.mxu1 %v1056_v61 }
  0x4e   :  { %500 = vadd.xlane.f32.xlu1 %v499_v18  ;;  %v246_v52 = vcombine.high %v226_v55, %v242_v24  ;;  %v985_v53 = vcombine.high %v242_v24, %v242_v24  ;;  %v509_v54 = vadd.f32 %v508_v49, %v507_v22  ;;  %v464_v56 = vadd.f32 %v463_v50, %v462_v48 }
  0x4f   :  { %455 = vadd.xlane.f32.xlu0 %v454_v46  ;;  %1026 = vmatprep.subr.bf16.mxu1 %v1145_v19  ;;  %v579_v27 = vand.u32 127, %v116_v0  ;;  %vm648_vm5 = vcmask 1043459   ;;  %vm650_vm6 = vcmask 1044484   ;;  %vm652_vm7 = vcmask 1045509  }
  0x50   :  { %v467_v57 = vsel %vm431_vm0, %v246_v52, 0.0  ;;  %v468_v58 = vsel %vm431_vm0, %v985_v53, 0.0  ;;  %vm654_vm8 = vcmask 1046534   ;;  %vm656_vm9 = vcmask 1047559  }
  0x51   :  { %v469_v59 = vadd.f32 %v468_v58, %v467_v57  ;;  %1027 = vmatpush3.bf16.msra.mxu1 %v1057_v62  ;;  %v1325_v23 = vsub.s32 %v579_v27, %v1200_v6  ;;  %vm666_vm10 = vcmask 31744  }
  0x52   :  { %505 = vadd.xlane.f32.xlu1 %v504_v47  ;;  %1028 = vmatprep.subr.bf16.mxu1 %v1145_v19 }
  0x53   :  { %460 = vadd.xlane.f32.xlu0 %v459_v51 }
  0x55   :  { %1029 = vmatpush3.bf16.msra.mxu1 %v1058_v25 }
  0x56   :  { %510 = vadd.xlane.f32.xlu1 %v509_v54  ;;  %1030 = vmatprep.subr.bf16.mxu1 %v1145_v19 }
  0x57   :  { %465 = vadd.xlane.f32.xlu0 %v464_v56 }
  0x59   :  { %1031 = vmatpush3.bf16.msra.mxu1 %v1059_v32 }
  0x5a   :  { %1032 = vmatprep.subr.bf16.mxu1 %v1145_v19 }
  0x5b   :  { %470 = vadd.xlane.f32.xlu0 %v469_v59 }
  0x5d   :  { %1033 = vmatpush3.bf16.msra.mxu1 %v1060_v63 }
  0x5e   :  { %1034 = vmatprep.subr.bf16.mxu1 %v1145_v19 }
  0x61   :  { %1035 = vmatpush3.bf16.msra.mxu1 %v1061_v26 }
  0x62   :  { %1036 = vmatprep.subr.bf16.mxu1 %v1145_v19 }
  0x65   :  { %1037 = vmatpush3.bf16.msra.mxu1 %v1062_v33 }
  0x66   :  { %1038 = vmatprep.subr.bf16.mxu1 %v1145_v19 }
  0xc7   :  { %v476_v1 = vpop.xlane.xlu1 %475 }
  0xc8   :  { %v521_v12 = vmul.f32 0.00390625, %v476_v1 }
  0xca   :  { %v436_v2 = vpop.xlane.xlu0 %435  ;;  %v537_v34 = vpack.c.bf16 %v521_v12, %v521_v12 }
  0xcb   :  { %v481_v3 = vpop.xlane.xlu1 %480  ;;  %v513_v44 = vmul.f32 0.00390625, %v436_v2 }
  0xcc   :  { %v522_v13 = vmul.f32 0.00390625, %v481_v3  ;;  %v570_v0 = vunpack.c.l.b16 %v537_v34 }
  0xcd   :  { %v529_v30 = vpack.c.bf16 %v513_v44, %v513_v44 }
  0xce   :  { %v441_v4 = vpop.xlane.xlu0 %440  ;;  %v538_v43 = vpack.c.bf16 %v522_v13, %v522_v13  ;;  %v615_v50 = vrot.slane %v570_v0, %v1325_v23 }
  0xcf   :  { %v486_v5 = vpop.xlane.xlu1 %485  ;;  %v514_v14 = vmul.f32 0.00390625, %v441_v4  ;;  %v562_v52 = vunpack.c.l.b16 %v529_v30 }
  0xd0   :  { %v523_v38 = vmul.f32 0.00390625, %v486_v5  ;;  %v571_v37 = vunpack.c.l.b16 %v538_v43 }
  0xd1   :  { %v530_v18 = vpack.c.bf16 %v514_v14, %v514_v14  ;;  %v583_v33 = vrot.slane %v562_v52, %v1325_v23 }
  0xd2   :  { %v446_v7 = vpop.xlane.xlu0 %445  ;;  %v539_v24 = vpack.c.bf16 %v523_v38, %v523_v38  ;;  %v619_v56 = vrot.slane %v571_v37, %v1325_v23 }
  0xd3   :  { %v491_v8 = vpop.xlane.xlu1 %490  ;;  %v515_v55 = vmul.f32 0.00390625, %v446_v7  ;;  %v563_v42 = vunpack.c.l.b16 %v530_v18 }
  0xd4   :  { %v524_v16 = vmul.f32 0.00390625, %v491_v8  ;;  %v572_v22 = vunpack.c.l.b16 %v539_v24  ;;  %v658_v4 = vsel %vm644_vm3, %v619_v56, %v615_v50 }
  0xd5   :  { %v531_v39 = vpack.c.bf16 %v515_v55, %v515_v55  ;;  %v587_v19 = vrot.slane %v563_v42, %v1325_v23 }
  0xd6   :  { %v451_v9 = vpop.xlane.xlu0 %450  ;;  %v540_v35 = vpack.c.bf16 %v524_v16, %v524_v16  ;;  %v623_v25 = vrot.slane %v572_v22, %v1325_v23  ;;  %v832_v22 = vadd.s32 8, %v1200_v6 }
  0xd7   :  { %v496_v10 = vpop.xlane.xlu1 %495  ;;  %v516_v20 = vmul.f32 0.00390625, %v451_v9  ;;  %v564_v57 = vunpack.c.l.b16 %v531_v39  ;;  %v645_v27 = vsel %vm644_vm3, %v587_v19, %v583_v33 }
  0xd8   :  { %v525_v17 = vmul.f32 0.00390625, %v496_v10  ;;  %v573_v53 = vunpack.c.l.b16 %v540_v35  ;;  %v659_v38 = vsel %vm646_vm4, %v623_v25, %v658_v4  ;;  %vm837_vm11 = vcmp.lt.s32.totalorder %v832_v22, 10 }
  0xd9   :  { %v532_v45 = vpack.c.bf16 %v516_v20, %v516_v20  ;;  %v591_v5 = vrot.slane %v564_v57, %v1325_v23 }
  0xda   :  { %v541_v40 = vpack.c.bf16 %v525_v17, %v525_v17  ;;  %v627_v1 = vrot.slane %v573_v53, %v1325_v23 }
  0xdb   :  { %v501_v15 = vpop.xlane.xlu1 %500  ;;  %v565_v31 = vunpack.c.l.b16 %v532_v45  ;;  %v647_v17 = vsel %vm646_vm4, %v591_v5, %v645_v27 }
  0xdc   :  { %v456_v11 = vpop.xlane.xlu0 %455  ;;  %v526_v21 = vmul.f32 0.00390625, %v501_v15  ;;  %v574_v58 = vunpack.c.l.b16 %v541_v40  ;;  %v660_v44 = vsel %vm648_vm5, %v627_v1, %v659_v38  ;;  %v1063_v40 = vld [vmem:[#allocation8 + $0x38] sm:$0xff]  }
  0xdd   :  { %v517_v28 = vmul.f32 0.00390625, %v456_v11  ;;  %v595_v10 = vrot.slane %v565_v31, %v1325_v23  ;;  %1039 = vmatpush3.bf16.msra.mxu1 %v1063_v40 }
  0xde   :  { %v542_v46 = vpack.c.bf16 %v526_v21, %v526_v21  ;;  %v631_v7 = vrot.slane %v574_v58, %v1325_v23 }
  0xdf   :  { %v506_v29 = vpop.xlane.xlu1 %505  ;;  %v533_v49 = vpack.c.bf16 %v517_v28, %v517_v28  ;;  %v649_v20 = vsel %vm648_vm5, %v595_v10, %v647_v17 }
  0xe0   :  { %v527_v36 = vmul.f32 0.00390625, %v506_v29  ;;  %v461_v41 = vpop.xlane.xlu0 %460  ;;  %v575_v61 = vunpack.c.l.b16 %v542_v46  ;;  %v661_v11 = vsel %vm650_vm6, %v631_v7, %v660_v44 }
  0xe1   :  { %v518_v47 = vmul.f32 0.00390625, %v461_v41  ;;  %v566_v32 = vunpack.c.l.b16 %v533_v49 }
  0xe2   :  { %v543_v51 = vpack.c.bf16 %v527_v36, %v527_v36  ;;  %v635_v12 = vrot.slane %v575_v61, %v1325_v23 }
  0xe3   :  { %v511_v48 = vpop.xlane.xlu1 %510  ;;  %v534_v54 = vpack.c.bf16 %v518_v47, %v518_v47  ;;  %v599_v15 = vrot.slane %v566_v32, %v1325_v23 }
  0xe4   :  { %v466_v59 = vpop.xlane.xlu0 %465  ;;  %v528_v60 = vmul.f32 0.00390625, %v511_v48  ;;  %v576_v63 = vunpack.c.l.b16 %v543_v51  ;;  %v662_v21 = vsel %vm652_vm7, %v635_v12, %v661_v11 }
  0xe5   :  { %v519_v62 = vmul.f32 0.00390625, %v466_v59  ;;  %v567_v2 = vunpack.c.l.b16 %v534_v54  ;;  %v651_v28 = vsel %vm650_vm6, %v599_v15, %v649_v20  ;;  %v884_v15 = vld [vmem:[#allocation4] sm:$0x1] }
  0xe6   :  { %v544_v26 = vpack.c.bf16 %v528_v60, %v528_v60  ;;  %v639_v34 = vrot.slane %v576_v63, %v1325_v23 }
  0xe7   :  { %v535_v3 = vpack.c.bf16 %v519_v62, %v519_v62  ;;  %v603_v16 = vrot.slane %v567_v2, %v1325_v23 }
  0xe8   :  { %v577_v8 = vunpack.c.l.b16 %v544_v26  ;;  %v471_v9 = vpop.xlane.xlu0 %470  ;;  %v663_v29 = vsel %vm654_vm8, %v639_v34, %v662_v21 }
  0xe9   :  { %v568_v13 = vunpack.c.l.b16 %v535_v3  ;;  %v520_v14 = vmul.f32 0.00390625, %v471_v9  ;;  %v653_v0 = vsel %vm652_vm7, %v603_v16, %v651_v28 }
  0xea   :  { %v643_v43 = vrot.slane %v577_v8, %v1325_v23 }
  0xeb   :  { %v536_v55 = vpack.c.bf16 %v520_v14, %v520_v14  ;;  %v607_v18 = vrot.slane %v568_v13, %v1325_v23  ;;  %v874_v14 = vld [vmem:[#allocation3] sm:$0x1] }
  0xec   :  { %v664_v30 = vsel %vm656_vm9, %v643_v43, %v663_v29 }
  0xed   :  { %v569_v24 = vunpack.c.l.b16 %v536_v55  ;;  %v655_v36 = vsel %vm654_vm8, %v607_v18, %v653_v0  ;;  %v917_v0 = vsub.s32 0, %v1200_v6 }
  0xef   :  { %v611_v35 = vrot.slane %v569_v24, %v1325_v23  ;;  %v995_v23 = vld [vmem:[%s1383_s3] ss:$0 sm:$0xff] }
  0xf1   :  { %v657_v37 = vsel %vm656_vm9, %v611_v35, %v655_v36 }
  0xf2   :  { %v665_v39 = vpack.c.b16 %v664_v30, %v657_v37  ;;  %v1005_v37 = vld [vmem:[%s1383_s3 + $0x1] ss:$0 sm:$0xff] }
  0xf4   :  { %1021 = vmatmul.mubr.msk.bf16.vlgmr.msra.gmra.mrb[0].mxu0 %vm666_vm10, %v665_v39 }
 0x1c7   :  { %v708_v41 = vpop.f32.mrb[0].mxu0 }
 0x1c8   :  { %v1022_v42 = vpop.f32.mrb[1].mxu0 }
 0x1c9   :  { %v711_v45 = vpop.f32.mrb[2].mxu0 }
 0x1ca   :  { %v715_v46 = vpack.c.bf16 %v711_v45, %v708_v41  ;;  %v1023_v47 = vpop.f32.mrb[3].mxu0  ;;  %v1006_v45 = vld [vmem:[%s1383_s3 + $0x2] ss:$0 sm:$0xff] }
 0x1cc   :  { %1041 = vmatmul.mubr.bf16.vlgmr.msra.gmra.mrb[0].mxu1 %v715_v46 }
 0x29f   :  { %v819_v49 = vpop.f32.mrb[0].mxu1 }
 0x2a0   :  { %v1042_v51 = vpop.f32.mrb[1].mxu1  ;;  %v820_v53 = vadd.f32 %v995_v23, %v819_v49 }
 0x2a1   :  { %v822_v48 = vpop.f32.mrb[2].mxu1 }
 0x2a2   :  { %v823_v50 = vadd.f32 %v995_v23, %v822_v48  ;;  %v1043_v52 = vpop.f32.mrb[3].mxu1 }
 0x2a4   :  { %v847_v54 = vsel %vm837_vm11, %v823_v50, 0.0 }
 0x2a5   :  { %v848_v56 = vadd.f32 %v847_v54, %v820_v53 }
 0x2a7   :  { %v849_v57 = vrot.slane %v848_v56, 4 }
 0x2a9   :  { %v850_v58 = vadd.f32 %v849_v57, %v848_v56 }
 0x2ab   :  { %v851_v59 = vrot.slane %v850_v58, 2 }
 0x2ad   :  { %v852_v60 = vadd.f32 %v851_v59, %v850_v58 }
 0x2af   :  { %v853_v19 = vrot.slane %v852_v60, 1 }
 0x2b1   :  { %v854_v31 = vadd.f32 %v853_v19, %v852_v60 }
 0x2b3   :  { %v855_v61 = vmul.f32 0.1, %v854_v31 }
 0x2b5   :  { %856 = vst [vmem:[#allocation2] sm:$0x1] %v855_v61 }
 0x2bc   :  { %v1004_v62 = vld [vmem:[#allocation2] ss:$0 sm:$0xff] }
 0x2bd   :  { %v866_v25 = vsub.f32 %v820_v53, %v1004_v62  ;;  %v867_v32 = vsub.f32 %v823_v50, %v1004_v62  ;;  %v901_v24 = vld [vmem:[#allocation2] sm:$0x1] }
 0x2bf   :  { %v873_v63 = vsel %vm837_vm11, %v867_v32, 0.0  ;;  %v885_v26 = vmul.f32 %v866_v25, %v866_v25 }
 0x2c0   :  { %v875_v33 = vadd.f32 %v873_v63, %v866_v25  ;;  %v886_v1 = vmul.f32 %v873_v63, %v873_v63 }
 0x2c2   :  { %v876_v2 = vrot.slane %v875_v33, 4  ;;  %v887_v3 = vadd.f32 %v886_v1, %v885_v26 }
 0x2c4   :  { %v877_v4 = vadd.f32 %v876_v2, %v875_v33  ;;  %v888_v5 = vrot.slane %v887_v3, 4 }
 0x2c6   :  { %v878_v7 = vrot.slane %v877_v4, 2  ;;  %v889_v8 = vadd.f32 %v888_v5, %v887_v3 }
 0x2c8   :  { %v879_v9 = vadd.f32 %v878_v7, %v877_v4  ;;  %v890_v10 = vrot.slane %v889_v8, 2 }
 0x2ca   :  { %v880_v12 = vrot.slane %v879_v9, 1  ;;  %v891_v13 = vadd.f32 %v890_v10, %v889_v8 }
 0x2cc   :  { %v881_v27 = vadd.f32 %v880_v12, %v879_v9  ;;  %v892_v38 = vrot.slane %v891_v13, 1 }
 0x2ce   :  { %v882_v34 = vadd.f32 %v881_v27, %v874_v14  ;;  %v893_v44 = vadd.f32 %v892_v38, %v891_v13 }
 0x2d0   :  { %883 = vst [vmem:[#allocation3] sm:$0x1] %v882_v34  ;;  %v894_v16 = vadd.f32 %v893_v44, %v884_v15 }
 0x2d2   :  { %895 = vst [vmem:[#allocation4] sm:$0x1] %v894_v16 }
 0x2d7   :  { %v899_v43 = vld [vmem:[#allocation3] sm:$0x1] }
 0x2d8   :  { %v900_v55 = vmul.f32 0.1, %v899_v43 }
 0x2d9   :  { %v903_v17 = vld [vmem:[#allocation4] sm:$0x1] }
 0x2da   :  { %v904_v11 = vmul.f32 0.1, %v903_v17  ;;  %v905_v18 = vmul.f32 %v900_v55, %v900_v55  ;;  %v902_v29 = vadd.f32 %v901_v24, %v900_v55 }
 0x2dc   :  { %v906_v20 = vsub.f32 %v904_v11, %v905_v18  ;;  %v918_v30 = vrot.slane %v902_v29, %v917_v0 }
 0x2de   :  { %v907_v21 = vmax.f32 %v906_v20, 0.0  ;;  %v920_v35 = vsub.f32 %v820_v53, %v918_v30  ;;  %v921_v36 = vsub.f32 %v823_v50, %v918_v30 }
 0x2e0   :  { %v908_v28 = vadd.f32 1e-05, %v907_v21  ;;  %v926_v40 = vmul.f32 %v1005_v37, %v920_v35  ;;  %v927_v41 = vmul.f32 %v1005_v37, %v921_v36 }
 0x2e2   :  { %1064 = vrsqrt.f32 %v908_v28 }
 0x2ec   :  { %v1065_v39 = vpop.eup %1064 }
 0x2ed   :  { %v932_v42 = vrot.slane %v1065_v39, %v917_v0 }
 0x2ef   :  { %v934_v46 = vmul.f32 %v932_v42, %v926_v40  ;;  %v935_v6 = vmul.f32 %v932_v42, %v927_v41 }
 0x2f1   :  { %v940_v47 = vadd.f32 %v1006_v45, %v934_v46  ;;  %v941_v22 = vadd.f32 %v1006_v45, %v935_v6 }
 0x2f3   :  { %942 = vst [vmem:[#allocation10] sm:$0xff] %v940_v47  ;;  %943 = vst [vmem:[#allocation10 + $0x8] sm:$0xff] %v941_v22 }
 0x2f4   :  { %1121 = shalt.err (!%p1118_p6)
}
 0x2f5   :  { %s1122_s26 = scalar_lea.hbm %s1384_s4, 256 }
 0x2f6   :  { %p1123_p7 = scmp.ne.s32.totalorder %s1384_s4, %s1122_s26  ;;  %p1126_p8 = scmp.lt.u32.totalorder %s1122_s26, %s1384_s4 }
 0x2f8   :  { %p1128_p9 = pnand %p1126_p8, %p1123_p7 }
 0x2fa   :  { %1131 = shalt.err (!%p1128_p9)
}
 0x2fb   :  { %s1148_s30 = smov 128   ;;  %s1149_s5 = smov 8  }
 0x2fc   :  { %955 = dma.vmem_to_hbm [thread:$0]  %s950_s20, 256, %s1384_s4, [#allocation7], %s1148_s30, %s1148_s30, %s1149_s5  }
 0x2fd   :  { %1136 = dma.done.wait [#allocation7], 256  }
 0x2fe   :  { %1137 = vsyncadd [#allocation7], 4294967040 }
 0x2ff   :  { %959 = vsyncpa [#allocation6], 1 }
 0x300   :  { %960 = vsyncpa [#allocation9], 1 }
 0x301   :  { %961 = vsyncpa [#allocation7], 1 }

</bundles_post_ra>
